<compile_context>
chip_gen: v7x
topology: tpu7x:2x2x1
jax: 0.10.0
libtpu: 0.0.40
codegen_flags: <defaults>
</compile_context>

<pallas_src>
import jax
import jax.numpy as jnp
from jax.experimental import pallas as pl
from jax.experimental.pallas import tpu as pltpu

EPS = 1e-5
LANE = 128


def _round_up(n, m):
    return (n + m - 1) // m * m


def _vmem_cap_bytes():
    """Physical VMEM of the local generation (128 MiB v5e/v6e, 64 MiB/TC v7x)."""
    try:
        return int(pltpu.get_tpu_info().vmem_capacity_bytes)
    except Exception:
        return 64 << 20  # conservative fallback (v7x per-TC)


# --------------------------------------------------------------------------- #
# Kernel
# --------------------------------------------------------------------------- #
def mlp_kernel(x_ref, w1_ref, w2_ref, w3_ref, vec_ref, o_ref):
    """Fused bn0 -> fc1 -> bn1 -> relu -> fc2 -> bn2 -> relu -> fc3.

    x_ref:   [B, Np]   f32   (features zero-padded to a multiple of 128)
    w1_ref:  [Np, Hp]  mxu dtype  (bn0 gamma already folded into rows)
    w2_ref:  [Hp, Hp]  mxu dtype
    w3_ref:  [Hp, Op]  mxu dtype
    vec_ref: [8, Fmax] f32   rows: 0=g1, 1=be1, 2=g2, 3=be2, 4=b3
    o_ref:   [B, Op]   f32
    """
    B = x_ref.shape[0]
    Hp = w1_ref.shape[1]
    Op = w3_ref.shape[1]
    inv_b = 1.0 / B
    mxu_dt = w1_ref.dtype

    vec = vec_ref[...]
    g1, be1 = vec[0:1, :Hp], vec[1:2, :Hp]
    g2, be2 = vec[2:3, :Hp], vec[3:4, :Hp]
    b3 = vec[4:5, :Op]

    def bn_stats(h):
        # Single-pass batch statistics (biased variance), training-mode BN.
        # Clamp: E[h^2] - E[h]^2 can go slightly negative from f32 cancellation.
        s1 = jnp.sum(h, axis=0, keepdims=True)
        s2 = jnp.sum(h * h, axis=0, keepdims=True)
        mean = s1 * inv_b
        var = jnp.maximum(s2 * inv_b - mean * mean, 0.0)
        return mean, jax.lax.rsqrt(var + EPS)

    # bn0 (normalization only: gamma folded into w1, beta cancelled by bn1's mean sub)
    x = x_ref[...].astype(jnp.float32)
    mean0, inv0 = bn_stats(x)
    xn = (x - mean0) * inv0

    # fc1 -> bn1 -> relu   (fc1 bias cancelled by bn1)
    h1 = jnp.dot(xn.astype(mxu_dt), w1_ref[...], preferred_element_type=jnp.float32)
    mean1, inv1 = bn_stats(h1)
    scale1 = g1 * inv1
    h1 = jnp.maximum(h1 * scale1 + (be1 - mean1 * scale1), 0.0)

    # fc2 -> bn2 -> relu   (fc2 bias cancelled by bn2)
    h2 = jnp.dot(h1.astype(mxu_dt), w2_ref[...], preferred_element_type=jnp.float32)
    mean2, inv2 = bn_stats(h2)
    scale2 = g2 * inv2
    h2 = jnp.maximum(h2 * scale2 + (be2 - mean2 * scale2), 0.0)

    # fc3 (bias kept: no BN after it)
    out = jnp.dot(h2.astype(mxu_dt), w3_ref[...], preferred_element_type=jnp.float32) + b3
    o_ref[...] = out.astype(o_ref.dtype)


# --------------------------------------------------------------------------- #
# One-time weight preparation (hoisted out of the forward path)
# --------------------------------------------------------------------------- #
def prepare_params(params, *, mxu_dtype=jnp.bfloat16):
    """Do this ONCE per weight set, not per forward call.

    Folds bn0's gamma into fc1's weight rows (bn0's beta contribution and the
    fc1/fc2 biases are per-feature constants that the following training-mode
    BatchNorm cancels exactly, so they are dropped), pads every feature dim to
    a multiple of 128 lanes, casts MXU operands to `mxu_dtype`, and packs the
    remaining small per-feature vectors into a single [8, Fmax] tile.

    mxu_dtype=jnp.bfloat16 is the fast path on v5e/v6e/v7x (f32 accumulation is
    kept); pass jnp.float32 only for bit-accurate exactness checks.
    """
    n_in, hidden = params["w1"].shape
    n_out = params["w3"].shape[1]
    Np, Hp, Op = (_round_up(d, LANE) for d in (n_in, hidden, n_out))
    Fmax = max(Hp, Op)

    w1_eff = params["g0"][:, None] * params["w1"]  # fold bn0 gamma into fc1 rows

    def pad2(a, r, c):
        return jnp.zeros((r, c), a.dtype).at[: a.shape[0], : a.shape[1]].set(a)

    vec = jnp.zeros((8, Fmax), jnp.float32)
    vec = vec.at[0, :hidden].set(params["g1"])
    vec = vec.at[1, :hidden].set(params["be1"])
    vec = vec.at[2, :hidden].set(params["g2"])
    vec = vec.at[3, :hidden].set(params["be2"])
    vec = vec.at[4, :n_out].set(params["b3"])

    return dict(
        w1=pad2(w1_eff, Np, Hp).astype(mxu_dtype),
        w2=pad2(params["w2"], Hp, Hp).astype(mxu_dtype),
        w3=pad2(params["w3"], Hp, Op).astype(mxu_dtype),
        vec=vec,
        n_in=n_in, n_out=n_out, Np=Np, Hp=Hp, Op=Op,
    )


# --------------------------------------------------------------------------- #
# Forward call (only pads the activation and slices the output)
# --------------------------------------------------------------------------- #
def mlp_forward(x, prep):
    """x: [B, n_in] f32.  prep: output of prepare_params().

    For best bf16 vreg packing pick B as a multiple of 16 (8 for f32); any B works.
    """
    B, n_in = x.shape
    assert n_in == prep["n_in"], "feature dim mismatch vs prepared weights"
    Np, Hp, Op, n_out = prep["Np"], prep["Hp"], prep["Op"], prep["n_out"]

    x_p = x if Np == n_in else jnp.pad(x, ((0, 0), (0, Np - n_in)))
    args = (x_p, prep["w1"], prep["w2"], prep["w3"], prep["vec"])

    in_bytes = sum(int(a.size) * a.dtype.itemsize for a in args)
    out_bytes = B * Op * 4
    flops = 2 * B * (Np * Hp + Hp * Hp + Hp * Op)
    transcendentals = Np + 2 * Hp  # one rsqrt per BN feature

    # Explicit VMEM budget: inputs + output + f32 intermediates, 2x headroom,
    # capped by this generation's physical VMEM minus margin.
    est = in_bytes + out_bytes + 4 * B * max(Np, Hp, Op) * 4
    vmem_limit = int(min(max(2 * est, 4 << 20), _vmem_cap_bytes() - (8 << 20)))

    vmem_spec = pl.BlockSpec(memory_space=pltpu.MemorySpace.VMEM)
    out_p = pl.pallas_call(
        mlp_kernel,
        out_shape=jax.ShapeDtypeStruct((B, Op), jnp.float32),
        in_specs=[vmem_spec] * len(args),
        out_specs=vmem_spec,
        compiler_params=pltpu.CompilerParams(vmem_limit_bytes=vmem_limit),
        cost_estimate=pl.CostEstimate(
            flops=flops,
            transcendentals=transcendentals,
            bytes_accessed=in_bytes + out_bytes,
        ),
    )(*args)

    return out_p[:, :n_out]


# --------------------------------------------------------------------------- #
# Init + pure-JAX reference + self-check
# --------------------------------------------------------------------------- #
def init_params(key, n_in, n_out, hidden_dim):
    """PyTorch-style Linear init (uniform +-1/sqrt(fan_in)); Linear weights stored
    pre-transposed as [in, out].  BN gamma/beta are randomized (instead of the
    PyTorch default 1/0) so the folded-affine path is actually exercised."""
    ks = jax.random.split(key, 12)

    def linear(kw, kb, fan_in, fan_out):
        bound = 1.0 / jnp.sqrt(fan_in)
        w = jax.random.uniform(kw, (fan_in, fan_out), jnp.float32, -bound, bound)
        b = jax.random.uniform(kb, (fan_out,), jnp.float32, -bound, bound)
        return w, b

    w1, b1 = linear(ks[0], ks[1], n_in, hidden_dim)
    w2, b2 = linear(ks[2], ks[3], hidden_dim, hidden_dim)
    w3, b3 = linear(ks[4], ks[5], hidden_dim, n_out)

    def bn(kg, kb, n):
        g = jax.random.uniform(kg, (n,), jnp.float32, 0.5, 1.5)
        b = jax.random.uniform(kb, (n,), jnp.float32, -0.5, 0.5)
        return g, b

    g0, be0 = bn(ks[6], ks[7], n_in)
    g1, be1 = bn(ks[8], ks[9], hidden_dim)
    g2, be2 = bn(ks[10], ks[11], hidden_dim)

    return dict(
        w1=w1, b1=b1, w2=w2, b2=b2, w3=w3, b3=b3,
        g0=g0, be0=be0, g1=g1, be1=be1, g2=g2, be2=be2,
    )


def mlp_reference(x, p):
    """Pure-JAX reference faithful to the PyTorch module (training-mode BN,
    biases included, two-pass variance)."""
    def bn(h, g, b):
        m = jnp.mean(h, axis=0, keepdims=True)
        v = jnp.mean((h - m) ** 2, axis=0, keepdims=True)
        return (h - m) / jnp.sqrt(v + EPS) * g + b

    x = bn(x, p["g0"], p["be0"])
    h = jax.nn.relu(bn(x @ p["w1"] + p["b1"], p["g1"], p["be1"]))
    h = jax.nn.relu(bn(h @ p["w2"] + p["b2"], p["g2"], p["be2"]))
    return h @ p["w3"] + p["b3"]


if __name__ == "__main__":
    # B chosen as a multiple of 16 so bf16 [16,128] vregs are fully packed.
    B, n_in, hidden_dim, n_out = 16, 16, 32, 8

    key = jax.random.PRNGKey(0)
    k_x, k_p = jax.random.split(key)
    x = jax.random.normal(k_x, (B, n_in), jnp.float32)
    params = init_params(k_p, n_in, n_out, hidden_dim)

    ref = mlp_reference(x, params)

    # Exactness check (f32 MXU): proves the bias-drop / bn0-fold / padding /
    # one-pass-BN transformations are semantics-preserving.
    prep_f32 = prepare_params(params, mxu_dtype=jnp.float32)
    out_f32 = jax.block_until_ready(mlp_forward(x, prep_f32))
    assert out_f32.shape == (B, n_out)
    assert jnp.allclose(out_f32, ref, atol=1e-4, rtol=1e-4), "f32 kernel mismatch vs reference"

    # Fast path (bf16 MXU operands, f32 accumulation + f32 BN/ReLU) — the
    # recommended path on v5e, v6e and v7x.  prepare_params() is called ONCE;
    # repeated forward calls reuse the prepared (padded, bf16) weights.
    prep = prepare_params(params)  # one-time
    out_bf16 = jax.block_until_ready(mlp_forward(x, prep))
    out_bf16 = jax.block_until_ready(mlp_forward(x, prep))  # steady-state call
    assert out_bf16.shape == (B, n_out)
    assert jnp.allclose(out_bf16, ref, atol=2e-1, rtol=2e-1), "bf16 kernel mismatch vs reference"

    print("KERNEL_OK")
</pallas_src>

<mosaic_0001>
module attributes {stable_mosaic.version = 11 : i64} {
  func.func @mlp_kernel(%arg0: memref<16x128xf32, #tpu.memory_space<vmem>>, %arg1: memref<128x128xf32, #tpu.memory_space<vmem>>, %arg2: memref<128x128xf32, #tpu.memory_space<vmem>>, %arg3: memref<128x128xf32, #tpu.memory_space<vmem>>, %arg4: memref<8x128xf32, #tpu.memory_space<vmem>>, %arg5: memref<16x128xf32, #tpu.memory_space<vmem>>) attributes {dimension_semantics = [], scalar_prefetch = 0 : i64, scratch_operands = 0 : i64, tpu.core_type = #tpu.core_type<tc>} {
    %c0 = arith.constant 0 : index
    %c0_0 = arith.constant 0 : index
    %0 = vector.load %arg4[%c0, %c0_0] : memref<8x128xf32, #tpu.memory_space<vmem>>, vector<8x128xf32>
    %1 = vector.extract_strided_slice %0 {offsets = [0, 0], sizes = [1, 128], strides = [1, 1]} : vector<8x128xf32> to vector<1x128xf32>
    %2 = vector.extract_strided_slice %0 {offsets = [1, 0], sizes = [1, 128], strides = [1, 1]} : vector<8x128xf32> to vector<1x128xf32>
    %3 = vector.extract_strided_slice %0 {offsets = [2, 0], sizes = [1, 128], strides = [1, 1]} : vector<8x128xf32> to vector<1x128xf32>
    %4 = vector.extract_strided_slice %0 {offsets = [3, 0], sizes = [1, 128], strides = [1, 1]} : vector<8x128xf32> to vector<1x128xf32>
    %5 = vector.extract_strided_slice %0 {offsets = [4, 0], sizes = [1, 128], strides = [1, 1]} : vector<8x128xf32> to vector<1x128xf32>
    %c0_1 = arith.constant 0 : index
    %c0_2 = arith.constant 0 : index
    %6 = vector.load %arg0[%c0_1, %c0_2] : memref<16x128xf32, #tpu.memory_space<vmem>>, vector<16x128xf32>
    %cst = arith.constant dense<0.000000e+00> : vector<128xf32>
    %7 = vector.multi_reduction <add>, %6, %cst [0] : vector<16x128xf32> to vector<128xf32>
    %8 = vector.shape_cast %7 : vector<128xf32> to vector<1x128xf32>
    %9 = arith.mulf %6, %6 : vector<16x128xf32>
    %cst_3 = arith.constant dense<0.000000e+00> : vector<128xf32>
    %10 = vector.multi_reduction <add>, %9, %cst_3 [0] : vector<16x128xf32> to vector<128xf32>
    %11 = vector.shape_cast %10 : vector<128xf32> to vector<1x128xf32>
    %cst_4 = arith.constant 6.250000e-02 : f32
    %12 = vector.broadcast %cst_4 : f32 to vector<1x128xf32>
    %13 = arith.mulf %8, %12 : vector<1x128xf32>
    %cst_5 = arith.constant 6.250000e-02 : f32
    %14 = vector.broadcast %cst_5 : f32 to vector<1x128xf32>
    %15 = arith.mulf %11, %14 : vector<1x128xf32>
    %16 = arith.mulf %13, %13 : vector<1x128xf32>
    %17 = arith.subf %15, %16 : vector<1x128xf32>
    %cst_6 = arith.constant 0.000000e+00 : f32
    %18 = vector.broadcast %cst_6 : f32 to vector<1x128xf32>
    %19 = arith.maximumf %17, %18 : vector<1x128xf32>
    %cst_7 = arith.constant 9.99999974E-6 : f32
    %20 = vector.broadcast %cst_7 : f32 to vector<1x128xf32>
    %21 = arith.addf %19, %20 : vector<1x128xf32>
    %22 = math.rsqrt %21 : vector<1x128xf32>
    %23 = vector.broadcast %13 : vector<1x128xf32> to vector<16x128xf32>
    %24 = arith.subf %6, %23 : vector<16x128xf32>
    %25 = vector.broadcast %22 : vector<1x128xf32> to vector<16x128xf32>
    %26 = arith.mulf %24, %25 : vector<16x128xf32>
    %c0_8 = arith.constant 0 : index
    %c0_9 = arith.constant 0 : index
    %27 = vector.load %arg1[%c0_8, %c0_9] : memref<128x128xf32, #tpu.memory_space<vmem>>, vector<128x128xf32>
    %cst_10 = arith.constant dense<0.000000e+00> : vector<16x128xf32>
    %28 = tpu.matmul %26, %27, %cst_10 {dimension_numbers = #tpu.dot_dimension_numbers<[1], [0], [0], [1], [0, 0, 1, 1], [], []>} : vector<16x128xf32>, vector<128x128xf32>, vector<16x128xf32> -> vector<16x128xf32>
    %cst_11 = arith.constant dense<0.000000e+00> : vector<128xf32>
    %29 = vector.multi_reduction <add>, %28, %cst_11 [0] : vector<16x128xf32> to vector<128xf32>
    %30 = vector.shape_cast %29 : vector<128xf32> to vector<1x128xf32>
    %31 = arith.mulf %28, %28 : vector<16x128xf32>
    %cst_12 = arith.constant dense<0.000000e+00> : vector<128xf32>
    %32 = vector.multi_reduction <add>, %31, %cst_12 [0] : vector<16x128xf32> to vector<128xf32>
    %33 = vector.shape_cast %32 : vector<128xf32> to vector<1x128xf32>
    %cst_13 = arith.constant 6.250000e-02 : f32
    %34 = vector.broadcast %cst_13 : f32 to vector<1x128xf32>
    %35 = arith.mulf %30, %34 : vector<1x128xf32>
    %cst_14 = arith.constant 6.250000e-02 : f32
    %36 = vector.broadcast %cst_14 : f32 to vector<1x128xf32>
    %37 = arith.mulf %33, %36 : vector<1x128xf32>
    %38 = arith.mulf %35, %35 : vector<1x128xf32>
    %39 = arith.subf %37, %38 : vector<1x128xf32>
    %cst_15 = arith.constant 0.000000e+00 : f32
    %40 = vector.broadcast %cst_15 : f32 to vector<1x128xf32>
    %41 = arith.maximumf %39, %40 : vector<1x128xf32>
    %cst_16 = arith.constant 9.99999974E-6 : f32
    %42 = vector.broadcast %cst_16 : f32 to vector<1x128xf32>
    %43 = arith.addf %41, %42 : vector<1x128xf32>
    %44 = math.rsqrt %43 : vector<1x128xf32>
    %45 = arith.mulf %1, %44 : vector<1x128xf32>
    %46 = vector.broadcast %45 : vector<1x128xf32> to vector<16x128xf32>
    %47 = arith.mulf %28, %46 : vector<16x128xf32>
    %48 = arith.mulf %35, %45 : vector<1x128xf32>
    %49 = arith.subf %2, %48 : vector<1x128xf32>
    %50 = vector.broadcast %49 : vector<1x128xf32> to vector<16x128xf32>
    %51 = arith.addf %47, %50 : vector<16x128xf32>
    %cst_17 = arith.constant 0.000000e+00 : f32
    %52 = vector.broadcast %cst_17 : f32 to vector<16x128xf32>
    %53 = arith.maximumf %51, %52 : vector<16x128xf32>
    %c0_18 = arith.constant 0 : index
    %c0_19 = arith.constant 0 : index
    %54 = vector.load %arg2[%c0_18, %c0_19] : memref<128x128xf32, #tpu.memory_space<vmem>>, vector<128x128xf32>
    %cst_20 = arith.constant dense<0.000000e+00> : vector<16x128xf32>
    %55 = tpu.matmul %53, %54, %cst_20 {dimension_numbers = #tpu.dot_dimension_numbers<[1], [0], [0], [1], [0, 0, 1, 1], [], []>} : vector<16x128xf32>, vector<128x128xf32>, vector<16x128xf32> -> vector<16x128xf32>
    %cst_21 = arith.constant dense<0.000000e+00> : vector<128xf32>
    %56 = vector.multi_reduction <add>, %55, %cst_21 [0] : vector<16x128xf32> to vector<128xf32>
    %57 = vector.shape_cast %56 : vector<128xf32> to vector<1x128xf32>
    %58 = arith.mulf %55, %55 : vector<16x128xf32>
    %cst_22 = arith.constant dense<0.000000e+00> : vector<128xf32>
    %59 = vector.multi_reduction <add>, %58, %cst_22 [0] : vector<16x128xf32> to vector<128xf32>
    %60 = vector.shape_cast %59 : vector<128xf32> to vector<1x128xf32>
    %cst_23 = arith.constant 6.250000e-02 : f32
    %61 = vector.broadcast %cst_23 : f32 to vector<1x128xf32>
    %62 = arith.mulf %57, %61 : vector<1x128xf32>
    %cst_24 = arith.constant 6.250000e-02 : f32
    %63 = vector.broadcast %cst_24 : f32 to vector<1x128xf32>
    %64 = arith.mulf %60, %63 : vector<1x128xf32>
    %65 = arith.mulf %62, %62 : vector<1x128xf32>
    %66 = arith.subf %64, %65 : vector<1x128xf32>
    %cst_25 = arith.constant 0.000000e+00 : f32
    %67 = vector.broadcast %cst_25 : f32 to vector<1x128xf32>
    %68 = arith.maximumf %66, %67 : vector<1x128xf32>
    %cst_26 = arith.constant 9.99999974E-6 : f32
    %69 = vector.broadcast %cst_26 : f32 to vector<1x128xf32>
    %70 = arith.addf %68, %69 : vector<1x128xf32>
    %71 = math.rsqrt %70 : vector<1x128xf32>
    %72 = arith.mulf %3, %71 : vector<1x128xf32>
    %73 = vector.broadcast %72 : vector<1x128xf32> to vector<16x128xf32>
    %74 = arith.mulf %55, %73 : vector<16x128xf32>
    %75 = arith.mulf %62, %72 : vector<1x128xf32>
    %76 = arith.subf %4, %75 : vector<1x128xf32>
    %77 = vector.broadcast %76 : vector<1x128xf32> to vector<16x128xf32>
    %78 = arith.addf %74, %77 : vector<16x128xf32>
    %cst_27 = arith.constant 0.000000e+00 : f32
    %79 = vector.broadcast %cst_27 : f32 to vector<16x128xf32>
    %80 = arith.maximumf %78, %79 : vector<16x128xf32>
    %c0_28 = arith.constant 0 : index
    %c0_29 = arith.constant 0 : index
    %81 = vector.load %arg3[%c0_28, %c0_29] : memref<128x128xf32, #tpu.memory_space<vmem>>, vector<128x128xf32>
    %cst_30 = arith.constant dense<0.000000e+00> : vector<16x128xf32>
    %82 = tpu.matmul %80, %81, %cst_30 {dimension_numbers = #tpu.dot_dimension_numbers<[1], [0], [0], [1], [0, 0, 1, 1], [], []>} : vector<16x128xf32>, vector<128x128xf32>, vector<16x128xf32> -> vector<16x128xf32>
    %83 = vector.broadcast %5 : vector<1x128xf32> to vector<16x128xf32>
    %84 = arith.addf %82, %83 : vector<16x128xf32>
    %c0_31 = arith.constant 0 : index
    %c0_32 = arith.constant 0 : index
    %85 = vector.load %arg5[%c0_31, %c0_32] : memref<16x128xf32, #tpu.memory_space<vmem>>, vector<16x128xf32>
    tpu.vector_store %arg5[%c0_31, %c0_32], %84 {strides = array<i32>} : memref<16x128xf32, #tpu.memory_space<vmem>>, vector<16x128xf32>,
    return
  }
}

</mosaic_0001>

<bundles_post_ra>
// kernel: tpu_custom_call.1
= control target key start
LH: loop header
LB: loop body
LE: loop exit
PB: predicated region body
PF: predicated region fallthrough
CT: control target
= control target key end

     0   :  { %10 = vsyncpa [#allocation3], 0  ;;  %s1019_s0 = inlined_call_operand.hbm [shape: f32[16,128], index: 0, kind: input, shape index: {}]   ;;  %s1020_s1 = inlined_call_operand.hbm [shape: f32[128,128], index: 1, kind: input, shape index: {}]   ;;  %s1021_s2 = inlined_call_operand.hbm [shape: f32[128,128], index: 2, kind: input, shape index: {}]   ;;  %s1022_s3 = inlined_call_operand.hbm [shape: f32[128,128], index: 3, kind: input, shape index: {}]   ;;  %s1023_s4 = inlined_call_operand.vmem [shape: f32[8,128], index: 4, kind: input, shape index: {}]   ;;  %s1024_s5 = inlined_call_operand.hbm [shape: f32[16,128], index: 5, kind: output, shape index: {}]  }
   0x1   :  { %11 = vsyncpa [#allocation6], 0 }
   0x2   :  { %12 = vsyncpa [#allocation9], 0 }
   0x3   :  { %13 = vsyncpa [#allocation4], 0  ;;  %s876_s18 = smov [#allocation5]   ;;  %s877_s20 = smov [#allocation2]  }
   0x4   :  { %s31_s19 = sshll.u32 %s876_s18, 4  ;;  %s19_s21 = sshll.u32 %s877_s20, 4  ;;  %s32_s19 = int_to_ptr.vmem [resolvable:$true] %s31_s19  ;;  %s913_s21 = int_to_ptr.vmem [resolvable:$true] %s19_s21 }
   0x5   :  { %s758_s24 = scalar_lea.hbm %s1020_s1, 2048 }
   0x6   :  { %p759_p0 = scmp.ne.s32.totalorder %s1020_s1, %s758_s24  ;;  %p762_p1 = scmp.lt.u32.totalorder %s758_s24, %s1020_s1 }
   0x8   :  { %p764_p2 = pnand %p762_p1, %p759_p0 }
   0xa   :  { %767 = shalt.err (!%p764_p2)
}
   0xb   :  { %s768_s29 = scalar_lea.vmem %s32_s19, 2048  ;;  %p773_p4 = scmp.lt.s32.totalorder %s32_s19, %s32_s19 }
   0xc   :  { %p769_p3 = scmp.ne.s32.totalorder %s32_s19, %s768_s29  ;;  %p774_p5 = scmp.lt.s32.totalorder %s768_s29, %s768_s29 }
   0xe   :  { %p775_p6 = por %p774_p5, %p773_p4 }
  0x10   :  { %p776_p7 = pnand %p775_p6, %p769_p3 }
  0x12   :  { %779 = shalt.err (!%p776_p7)
}
  0x13   :  { %s878_s30 = smov 128   ;;  %s879_s6 = smov 8  }
  0x14   :  { %37 = dma.hbm_to_vmem [thread:$0]  %s1020_s1, 2048, %s32_s19, [#allocation6], %s878_s30, %s878_s30, %s879_s6  }
  0x15   :  { %s780_s11 = scalar_lea.hbm %s1019_s0, 256 }
  0x16   :  { %p781_p8 = scmp.ne.s32.totalorder %s1019_s0, %s780_s11  ;;  %p784_p9 = scmp.lt.u32.totalorder %s780_s11, %s1019_s0 }
  0x18   :  { %p786_p10 = pnand %p784_p9, %p781_p8 }
  0x1a   :  { %789 = shalt.err (!%p786_p10)
}
  0x1b   :  { %s790_s16 = scalar_lea.vmem %s913_s21, 256  ;;  %p795_p12 = scmp.lt.s32.totalorder %s913_s21, %s913_s21 }
  0x1c   :  { %p791_p11 = scmp.ne.s32.totalorder %s913_s21, %s790_s16  ;;  %p796_p13 = scmp.lt.s32.totalorder %s790_s16, %s790_s16 }
  0x1e   :  { %p797_p0 = por %p796_p13, %p795_p12 }
  0x20   :  { %p798_p1 = pnand %p797_p0, %p791_p11 }
  0x22   :  { %801 = shalt.err (!%p798_p1)
}
  0x23   :  { %25 = dma.hbm_to_vmem [thread:$0]  %s1019_s0, 256, %s913_s21, [#allocation3], %s878_s30, %s878_s30, %s879_s6  }
  0x24   :  { %s880_s18 = smov [#allocation7]   ;;  %s881_s20 = smov [#allocation8]  }
  0x25   :  { %s43_s19 = sshll.u32 %s880_s18, 4  ;;  %s55_s22 = sshll.u32 %s881_s20, 4  ;;  %s44_s19 = int_to_ptr.vmem [resolvable:$true] %s43_s19  ;;  %s950_s22 = int_to_ptr.vmem [resolvable:$true] %s55_s22 }
  0x26   :  { %s802_s25 = scalar_lea.hbm %s1021_s2, 2048 }
  0x27   :  { %p803_p2 = scmp.ne.s32.totalorder %s1021_s2, %s802_s25  ;;  %p806_p3 = scmp.lt.u32.totalorder %s802_s25, %s1021_s2 }
  0x29   :  { %p808_p4 = pnand %p806_p3, %p803_p2 }
  0x2b   :  { %811 = shalt.err (!%p808_p4)
}
  0x2c   :  { %s812_s0 = scalar_lea.vmem %s44_s19, 2048  ;;  %p817_p6 = scmp.lt.s32.totalorder %s44_s19, %s44_s19 }
  0x2d   :  { %p813_p5 = scmp.ne.s32.totalorder %s44_s19, %s812_s0  ;;  %p818_p7 = scmp.lt.s32.totalorder %s812_s0, %s812_s0 }
  0x2f   :  { %p819_p8 = por %p818_p7, %p817_p6 }
  0x31   :  { %p820_p9 = pnand %p819_p8, %p813_p5 }
  0x33   :  { %823 = shalt.err (!%p820_p9)
}
  0x34   :  { %49 = dma.hbm_to_vmem [thread:$0]  %s1021_s2, 2048, %s44_s19, [#allocation6], %s878_s30, %s878_s30, %s879_s6  }
  0x35   :  { %s824_s10 = scalar_lea.hbm %s1022_s3, 2048 }
  0x36   :  { %p825_p10 = scmp.ne.s32.totalorder %s1022_s3, %s824_s10  ;;  %p828_p11 = scmp.lt.u32.totalorder %s824_s10, %s1022_s3 }
  0x38   :  { %p830_p12 = pnand %p828_p11, %p825_p10 }
  0x3a   :  { %833 = shalt.err (!%p830_p12)
}
  0x3b   :  { %s834_s15 = scalar_lea.vmem %s950_s22, 2048  ;;  %p839_p0 = scmp.lt.s32.totalorder %s950_s22, %s950_s22 }
  0x3c   :  { %p835_p13 = scmp.ne.s32.totalorder %s950_s22, %s834_s15  ;;  %p840_p1 = scmp.lt.s32.totalorder %s834_s15, %s834_s15 }
  0x3e   :  { %p841_p2 = por %p840_p1, %p839_p0 }
  0x40   :  { %p842_p3 = pnand %p841_p2, %p835_p13 }
  0x42   :  { %845 = shalt.err (!%p842_p3)
}
  0x43   :  { %61 = dma.hbm_to_vmem [thread:$0]  %s1022_s3, 2048, %s950_s22, [#allocation9], %s878_s30, %s878_s30, %s879_s6  }
  0x44   :  { %868 = dma.done.wait [#allocation3], 256  }
  0x45   :  { %869 = vsyncadd [#allocation3], 4294967040 }
  0x46   :  { %870 = dma.done.wait [#allocation6], 4096  }
  0x47   :  { %871 = vsyncadd [#allocation6], 4294963200 }
  0x48   :  { %872 = dma.done.wait [#allocation9], 2048  }
  0x49   :  { %873 = vsyncadd [#allocation9], 4294965248  ;;  %v106_v0 = vld [vmem:[#allocation5] sm:$0xff]  ;;  %v107_v1 = vld [vmem:[#allocation5 + $0x8] sm:$0xff] }
  0x4a   :  { %v108_v2 = vld [vmem:[#allocation5 + $0x10] sm:$0xff]  ;;  %v649_v3 = vpack.c.bf16 %v107_v1, %v106_v0  ;;  %v109_v4 = vld [vmem:[#allocation5 + $0x18] sm:$0xff]  ;;  %v110_v6 = vld [vmem:[#allocation5 + $0x20] sm:$0xff] }
  0x4b   :  { %v653_v5 = vpack.c.bf16 %v109_v4, %v108_v2  ;;  %v111_v7 = vld [vmem:[#allocation5 + $0x28] sm:$0xff]  ;;  %v77_v9 = vld [vmem:[#allocation2] sm:$0xff]  ;;  %v78_v10 = vld [vmem:[#allocation2 + $0x8] sm:$0xff] }
  0x4c   :  { %650 = vmatprep.subr.bf16.mxu0 %v649_v3  ;;  %v657_v8 = vpack.c.bf16 %v111_v7, %v110_v6  ;;  %v112_v11 = vld [vmem:[#allocation5 + $0x30] sm:$0xff]  ;;  %v113_v12 = vld [vmem:[#allocation5 + $0x38] sm:$0xff]  ;;  %v79_v13 = vadd.f32 %v78_v10, %v77_v9  ;;  %v86_v14 = vmul.f32 %v77_v9, %v77_v9  ;;  %v87_v15 = vmul.f32 %v78_v10, %v78_v10  ;;  %v114_v19 = vld [vmem:[#allocation5 + $0x40] sm:$0xff] }
  0x4d   :  { %652 = vmatpush3.bf16.msra.mxu0 %v649_v3  ;;  %v661_v18 = vpack.c.bf16 %v113_v12, %v112_v11  ;;  %v115_v20 = vld [vmem:[#allocation5 + $0x48] sm:$0xff]  ;;  %v116_v26 = vld [vmem:[#allocation5 + $0x50] sm:$0xff]  ;;  %v117_v27 = vld [vmem:[#allocation5 + $0x58] sm:$0xff] }
  0x4e   :  { %654 = vmatprep.subr.bf16.mxu0 %v653_v5  ;;  %v80_v16 = vrot.slane %v79_v13, 4  ;;  %v88_v17 = vadd.f32 %v87_v15, %v86_v14  ;;  %v665_v25 = vpack.c.bf16 %v115_v20, %v114_v19  ;;  %v669_v32 = vpack.c.bf16 %v117_v27, %v116_v26  ;;  %v118_v33 = vld [vmem:[#allocation5 + $0x60] sm:$0xff]  ;;  %v119_v34 = vld [vmem:[#allocation5 + $0x68] sm:$0xff]  ;;  %v120_v40 = vld [vmem:[#allocation5 + $0x70] sm:$0xff] }
  0x4f   :  { %v673_v39 = vpack.c.bf16 %v119_v34, %v118_v33  ;;  %v121_v41 = vld [vmem:[#allocation5 + $0x78] sm:$0xff]  ;;  %v240_v53 = vld [vmem:[#allocation7] sm:$0xff]  ;;  %v241_v54 = vld [vmem:[#allocation7 + $0x8] sm:$0xff] }
  0x50   :  { %v81_v21 = vadd.f32 %v80_v16, %v79_v13  ;;  %v89_v22 = vrot.slane %v88_v17, 4  ;;  %v677_v45 = vpack.c.bf16 %v121_v41, %v120_v40  ;;  %v681_v55 = vpack.c.bf16 %v241_v54, %v240_v53  ;;  %v242_v56 = vld [vmem:[#allocation7 + $0x10] sm:$0xff]  ;;  %v243_v57 = vld [vmem:[#allocation7 + $0x18] sm:$0xff]  ;;  %v244_v59 = vld [vmem:[#allocation7 + $0x20] sm:$0xff] }
  0x51   :  { %656 = vmatpush3.bf16.msra.mxu0 %v653_v5  ;;  %v685_v58 = vpack.c.bf16 %v243_v57, %v242_v56  ;;  %v245_v60 = vld [vmem:[#allocation7 + $0x28] sm:$0xff]  ;;  %v246_v62 = vld [vmem:[#allocation7 + $0x30] sm:$0xff]  ;;  %v247_v63 = vld [vmem:[#allocation7 + $0x38] sm:$0xff] }
  0x52   :  { %658 = vmatprep.subr.bf16.mxu0 %v657_v8  ;;  %v82_v23 = vrot.slane %v81_v21, 2  ;;  %v90_v24 = vadd.f32 %v89_v22, %v88_v17  ;;  %682 = vmatprep.subr.bf16.mxu1 %v681_v55  ;;  %v689_v61 = vpack.c.bf16 %v245_v60, %v244_v59  ;;  %v693_v0 = vpack.c.bf16 %v247_v63, %v246_v62  ;;  %v248_v1 = vld [vmem:[#allocation7 + $0x40] sm:$0xff]  ;;  %v249_v2 = vld [vmem:[#allocation7 + $0x48] sm:$0xff]  ;;  %v250_v4 = vld [vmem:[#allocation7 + $0x50] sm:$0xff] }
  0x53   :  { %684 = vmatpush3.bf16.msra.mxu1 %v681_v55  ;;  %v697_v3 = vpack.c.bf16 %v249_v2, %v248_v1  ;;  %v251_v5 = vld [vmem:[#allocation7 + $0x58] sm:$0xff]  ;;  %v252_v7 = vld [vmem:[#allocation7 + $0x60] sm:$0xff]  ;;  %v375_v56 = vld [vmem:[#allocation8 + $0x8] sm:$0xff] }
  0x54   :  { %v83_v28 = vadd.f32 %v82_v23, %v81_v21  ;;  %v91_v29 = vrot.slane %v90_v24, 2  ;;  %686 = vmatprep.subr.bf16.mxu1 %v685_v58  ;;  %v701_v6 = vpack.c.bf16 %v251_v5, %v250_v4  ;;  %v255_v11 = vld [vmem:[#allocation7 + $0x78] sm:$0xff]  ;;  %v374_v55 = vld [vmem:[#allocation8] sm:$0xff]  ;;  %v379_v62 = vld [vmem:[#allocation8 + $0x28] sm:$0xff] }
  0x55   :  { %660 = vmatpush3.bf16.msra.mxu0 %v657_v8  ;;  %v253_v8 = vld [vmem:[#allocation7 + $0x68] sm:$0xff]  ;;  %v713_v57 = vpack.c.bf16 %v375_v56, %v374_v55  ;;  %v377_v59 = vld [vmem:[#allocation8 + $0x18] sm:$0xff] }
  0x56   :  { %662 = vmatprep.subr.bf16.mxu0 %v661_v18  ;;  %v84_v30 = vrot.slane %v83_v28, 1  ;;  %v92_v31 = vadd.f32 %v91_v29, %v90_v24  ;;  %v381_v1 = vld [vmem:[#allocation8 + $0x38] sm:$0xff]  ;;  %v383_v4 = vld [vmem:[#allocation8 + $0x48] sm:$0xff] }
  0x57   :  { %688 = vmatpush3.bf16.msra.mxu1 %v685_v58  ;;  %v376_v58 = vld [vmem:[#allocation8 + $0x10] sm:$0xff] }
  0x58   :  { %v85_v35 = vadd.f32 %v84_v30, %v83_v28  ;;  %v93_v36 = vrot.slane %v92_v31, 1  ;;  %690 = vmatprep.subr.bf16.mxu1 %v689_v61  ;;  %v717_v60 = vpack.c.bf16 %v377_v59, %v376_v58 }
  0x59   :  { %664 = vmatpush3.bf16.msra.mxu0 %v661_v18 }
  0x5a   :  { %666 = vmatprep.subr.bf16.mxu0 %v665_v25  ;;  %v94_v37 = vadd.f32 %v93_v36, %v92_v31  ;;  %v95_v38 = vmul.f32 0.0625, %v85_v35 }
  0x5b   :  { %692 = vmatpush3.bf16.msra.mxu1 %v689_v61  ;;  %v378_v61 = vld [vmem:[#allocation8 + $0x20] sm:$0xff] }
  0x5c   :  { %v96_v42 = vmul.f32 0.0625, %v94_v37  ;;  %v97_v43 = vmul.f32 %v95_v38, %v95_v38  ;;  %v102_v48 = vsub.f32 %v77_v9, %v95_v38  ;;  %v103_v49 = vsub.f32 %v78_v10, %v95_v38  ;;  %694 = vmatprep.subr.bf16.mxu1 %v693_v0  ;;  %v254_v10 = vld [vmem:[#allocation7 + $0x70] sm:$0xff] }
  0x5d   :  { %668 = vmatpush3.bf16.msra.mxu0 %v665_v25  ;;  %v705_v9 = vpack.c.bf16 %v253_v8, %v252_v7  ;;  %v709_v12 = vpack.c.bf16 %v255_v11, %v254_v10  ;;  %v221_v37 = vlaneseq  ;;  %v721_v63 = vpack.c.bf16 %v379_v62, %v378_v61  ;;  %v385_v7 = vld [vmem:[#allocation8 + $0x58] sm:$0xff]  ;;  %v387_v10 = vld [vmem:[#allocation8 + $0x68] sm:$0xff] }
  0x5e   :  { %670 = vmatprep.subr.bf16.mxu0 %v669_v32  ;;  %v98_v44 = vsub.f32 %v96_v42, %v97_v43 }
  0x5f   :  { %696 = vmatpush3.bf16.msra.mxu1 %v693_v0  ;;  %v987_v38 = vshrl.u32 %v221_v37, 7  ;;  %v380_v0 = vld [vmem:[#allocation8 + $0x30] sm:$0xff] }
  0x60   :  { %v99_v46 = vmax.f32 %v98_v44, 0.0  ;;  %698 = vmatprep.subr.bf16.mxu1 %v697_v3  ;;  %v725_v2 = vpack.c.bf16 %v381_v1, %v380_v0 }
  0x61   :  { %672 = vmatpush3.bf16.msra.mxu0 %v669_v32  ;;  %v223_v40 = vsub.s32 0, %v987_v38  ;;  %v392_v56 = vsub.s32 4, %v987_v38 }
  0x62   :  { %674 = vmatprep.subr.bf16.mxu0 %v673_v39  ;;  %v100_v47 = vadd.f32 1e-05, %v99_v46 }
  0x63   :  { %700 = vmatpush3.bf16.msra.mxu1 %v697_v3  ;;  %v382_v3 = vld [vmem:[#allocation8 + $0x40] sm:$0xff] }
  0x64   :  { %752 = vrsqrt.f32 %v100_v47  ;;  %702 = vmatprep.subr.bf16.mxu1 %v701_v6  ;;  %v234_v47 = vsub.s32 1, %v987_v38  ;;  %v729_v5 = vpack.c.bf16 %v383_v4, %v382_v3 }
  0x65   :  { %676 = vmatpush3.bf16.msra.mxu0 %v673_v39  ;;  %v992_v39 = vld [vmem:[%s1023_s4] sm:$0xff]  ;;  %s882_s4 = smov [#allocation10]  }
  0x66   :  { %678 = vmatprep.subr.bf16.mxu0 %v677_v45  ;;  %s476_s17 = sshll.u32 %s882_s4, 4  ;;  %s477_s17 = int_to_ptr.vmem [resolvable:$true] %s476_s17 }
  0x67   :  { %704 = vmatpush3.bf16.msra.mxu1 %v701_v6  ;;  %v384_v6 = vld [vmem:[#allocation8 + $0x50] sm:$0xff]  ;;  %s846_s18 = scalar_lea.vmem %s477_s17, 256  ;;  %p851_p5 = scmp.lt.s32.totalorder %s477_s17, %s477_s17 }
  0x68   :  { %706 = vmatprep.subr.bf16.mxu1 %v705_v9  ;;  %v733_v8 = vpack.c.bf16 %v385_v7, %v384_v6  ;;  %p847_p4 = scmp.ne.s32.totalorder %s477_s17, %s846_s18  ;;  %p852_p6 = scmp.lt.s32.totalorder %s846_s18, %s846_s18 }
  0x69   :  { %680 = vmatpush3.bf16.msra.mxu0 %v677_v45 }
  0x6a   :  { %714 = vmatprep.subr.bf16.mxu0 %v713_v57  ;;  %p853_p7 = por %p852_p6, %p851_p5 }
  0x6b   :  { %708 = vmatpush3.bf16.msra.mxu1 %v705_v9  ;;  %v386_v9 = vld [vmem:[#allocation8 + $0x60] sm:$0xff] }
  0x6c   :  { %710 = vmatprep.subr.bf16.mxu1 %v709_v12  ;;  %v737_v11 = vpack.c.bf16 %v387_v10, %v386_v9  ;;  %p854_p8 = pnand %p853_p7, %p847_p4 }
  0x6e   :  { %v753_v50 = vpop.eup %752 }
  0x6f   :  { %v104_v51 = vmul.f32 %v753_v50, %v102_v48  ;;  %v105_v52 = vmul.f32 %v753_v50, %v103_v49  ;;  %712 = vmatpush3.bf16.msra.mxu1 %v709_v12  ;;  %v388_v12 = vld [vmem:[#allocation8 + $0x70] sm:$0xff] }
  0x71   :  { %576 = vmatprep.mubr.f32.mxu0 %v104_v51 }
  0x72   :  { %577 = vmatmul.mubr.f32.vlgmr.msra.gmra.mrb[0].mxu0 %v105_v52 }
  0x73   :  { %716 = vmatpush3.bf16.msra.mxu0 %v713_v57  ;;  %v393_v57 = vrot.slane %v992_v39, %v392_v56 }
  0x74   :  { %718 = vmatprep.subr.bf16.mxu0 %v717_v60 }
  0x77   :  { %720 = vmatpush3.bf16.msra.mxu0 %v717_v60 }
  0x78   :  { %722 = vmatprep.subr.bf16.mxu0 %v721_v63 }
  0x7b   :  { %724 = vmatpush3.bf16.msra.mxu0 %v721_v63 }
  0x7c   :  { %726 = vmatprep.subr.bf16.mxu0 %v725_v2 }
  0x7f   :  { %728 = vmatpush3.bf16.msra.mxu0 %v725_v2 }
  0x80   :  { %730 = vmatprep.subr.bf16.mxu0 %v729_v5 }
  0x83   :  { %732 = vmatpush3.bf16.msra.mxu0 %v729_v5 }
  0x84   :  { %734 = vmatprep.subr.bf16.mxu0 %v733_v8 }
  0x87   :  { %736 = vmatpush3.bf16.msra.mxu0 %v733_v8 }
  0x88   :  { %738 = vmatprep.subr.bf16.mxu0 %v737_v11 }
  0x8b   :  { %740 = vmatpush3.bf16.msra.mxu0 %v737_v11 }
 0x145   :  { %v578_v13 = vpop.f32.mrb[0].mxu0 }
 0x146   :  { %v205_v14 = vmul.f32 %v578_v13, %v578_v13  ;;  %v188_v15 = vpop.f32.mrb[1].mxu0 }
 0x147   :  { %v197_v16 = vadd.f32 %v578_v13, %v188_v15  ;;  %v204_v17 = vmul.f32 %v188_v15, %v188_v15 }
 0x149   :  { %v198_v18 = vrot.slane %v197_v16, 4  ;;  %v206_v19 = vadd.f32 %v205_v14, %v204_v17 }
 0x14b   :  { %v199_v20 = vadd.f32 %v198_v18, %v197_v16  ;;  %v207_v21 = vrot.slane %v206_v19, 4 }
 0x14d   :  { %v200_v22 = vrot.slane %v199_v20, 2  ;;  %v208_v23 = vadd.f32 %v207_v21, %v206_v19 }
 0x14f   :  { %v201_v24 = vadd.f32 %v200_v22, %v199_v20  ;;  %v209_v25 = vrot.slane %v208_v23, 2 }
 0x151   :  { %v202_v26 = vrot.slane %v201_v24, 1  ;;  %v210_v27 = vadd.f32 %v209_v25, %v208_v23 }
 0x153   :  { %v211_v28 = vrot.slane %v210_v27, 1  ;;  %v203_v29 = vadd.f32 %v202_v26, %v201_v24 }
 0x155   :  { %v212_v30 = vadd.f32 %v211_v28, %v210_v27  ;;  %v213_v31 = vmul.f32 0.0625, %v203_v29 }
 0x157   :  { %v214_v32 = vmul.f32 0.0625, %v212_v30  ;;  %v215_v33 = vmul.f32 %v213_v31, %v213_v31 }
 0x159   :  { %v216_v34 = vsub.f32 %v214_v32, %v215_v33 }
 0x15b   :  { %v217_v35 = vmax.f32 %v216_v34, 0.0 }
 0x15d   :  { %v218_v36 = vadd.f32 1e-05, %v217_v35 }
 0x15f   :  { %754 = vrsqrt.f32 %v218_v36 }
 0x169   :  { %v755_v41 = vpop.eup %754 }
 0x16a   :  { %v220_v42 = vmul.f32 %v755_v41, %v992_v39  ;;  %v357_v41 = vsub.s32 2, %v987_v38 }
 0x16c   :  { %v224_v43 = vrot.slane %v220_v42, %v223_v40  ;;  %v227_v44 = vmul.f32 %v220_v42, %v213_v31 }
 0x16e   :  { %v225_v45 = vmul.f32 %v224_v43, %v188_v15  ;;  %v229_v46 = vrot.slane %v227_v44, 7  ;;  %v226_v48 = vmul.f32 %v578_v13, %v224_v43  ;;  %v389_v13 = vld [vmem:[#allocation8 + $0x78] sm:$0xff] }
 0x16f   :  { %v741_v14 = vpack.c.bf16 %v389_v13, %v388_v12 }
 0x170   :  { %v231_v49 = vsub.f32 %v992_v39, %v229_v46 }
 0x171   :  { %742 = vmatprep.subr.bf16.mxu0 %v741_v14 }
 0x172   :  { %v235_v50 = vrot.slane %v231_v49, %v234_v47  ;;  %744 = vmatpush3.bf16.msra.mxu0 %v741_v14  ;;  %v368_v49 = vsub.s32 3, %v987_v38 }
 0x174   :  { %v236_v51 = vadd.f32 %v235_v50, %v225_v45  ;;  %v237_v52 = vadd.f32 %v235_v50, %v226_v48 }
 0x176   :  { %v238_v53 = vmax.f32 %v236_v51, 0.0  ;;  %v239_v54 = vmax.f32 %v237_v52, 0.0 }
 0x178   :  { %611 = vmatprep.mubr.f32.mxu1 %v238_v53 }
 0x179   :  { %612 = vmatmul.mubr.f32.vlgmr.msra.gmra.mrb[0].mxu1 %v239_v54 }
 0x24c   :  { %v613_v15 = vpop.f32.mrb[0].mxu1 }
 0x24d   :  { %v339_v16 = vmul.f32 %v613_v15, %v613_v15  ;;  %v322_v17 = vpop.f32.mrb[1].mxu1 }
 0x24e   :  { %v331_v18 = vadd.f32 %v613_v15, %v322_v17  ;;  %v338_v19 = vmul.f32 %v322_v17, %v322_v17 }
 0x250   :  { %v332_v20 = vrot.slane %v331_v18, 4  ;;  %v340_v21 = vadd.f32 %v339_v16, %v338_v19 }
 0x252   :  { %v333_v22 = vadd.f32 %v332_v20, %v331_v18  ;;  %v341_v23 = vrot.slane %v340_v21, 4 }
 0x254   :  { %v334_v24 = vrot.slane %v333_v22, 2  ;;  %v342_v25 = vadd.f32 %v341_v23, %v340_v21 }
 0x256   :  { %v335_v26 = vadd.f32 %v334_v24, %v333_v22  ;;  %v343_v27 = vrot.slane %v342_v25, 2 }
 0x258   :  { %v336_v28 = vrot.slane %v335_v26, 1  ;;  %v344_v29 = vadd.f32 %v343_v27, %v342_v25 }
 0x25a   :  { %v337_v30 = vadd.f32 %v336_v28, %v335_v26  ;;  %v345_v31 = vrot.slane %v344_v29, 1 }
 0x25c   :  { %v346_v32 = vadd.f32 %v345_v31, %v344_v29  ;;  %v347_v33 = vmul.f32 0.0625, %v337_v30 }
 0x25e   :  { %v348_v34 = vmul.f32 0.0625, %v346_v32  ;;  %v349_v35 = vmul.f32 %v347_v33, %v347_v33 }
 0x260   :  { %v350_v36 = vsub.f32 %v348_v34, %v349_v35 }
 0x262   :  { %v351_v37 = vmax.f32 %v350_v36, 0.0 }
 0x264   :  { %v352_v40 = vadd.f32 1e-05, %v351_v37 }
 0x266   :  { %756 = vrsqrt.f32 %v352_v40 }
 0x270   :  { %v757_v42 = vpop.eup %756 }
 0x271   :  { %v354_v43 = vmul.f32 %v757_v42, %v992_v39 }
 0x273   :  { %v358_v44 = vrot.slane %v354_v43, %v357_v41  ;;  %v361_v45 = vmul.f32 %v354_v43, %v347_v33 }
 0x275   :  { %v359_v46 = vmul.f32 %v358_v44, %v322_v17  ;;  %v360_v47 = vmul.f32 %v613_v15, %v358_v44  ;;  %v363_v48 = vrot.slane %v361_v45, 7 }
 0x277   :  { %v365_v50 = vsub.f32 %v992_v39, %v363_v48 }
 0x279   :  { %v369_v51 = vrot.slane %v365_v50, %v368_v49 }
 0x27b   :  { %v370_v52 = vadd.f32 %v369_v51, %v359_v46  ;;  %v371_v53 = vadd.f32 %v369_v51, %v360_v47 }
 0x27d   :  { %v372_v54 = vmax.f32 %v370_v52, 0.0  ;;  %v373_v55 = vmax.f32 %v371_v53, 0.0 }
 0x27f   :  { %646 = vmatprep.mubr.f32.mxu0 %v372_v54 }
 0x280   :  { %647 = vmatmul.mubr.f32.vlgmr.msra.gmra.mrb[2].mxu0 %v373_v55 }
 0x353   :  { %v648_v58 = vpop.f32.mrb[2].mxu0 }
 0x354   :  { %v466_v59 = vadd.f32 %v648_v58, %v393_v57  ;;  %v460_v60 = vpop.f32.mrb[3].mxu0 }
 0x355   :  { %v461_v61 = vadd.f32 %v460_v60, %v393_v57 }
 0x356   :  { %470 = vst [vmem:[#allocation10 + $0x8] sm:$0xff] %v466_v59 }
 0x357   :  { %469 = vst [vmem:[#allocation10] sm:$0xff] %v461_v61 }
 0x358   :  { %857 = shalt.err (!%p854_p8)
}
 0x359   :  { %s858_s22 = scalar_lea.hbm %s1024_s5, 256 }
 0x35a   :  { %p859_p9 = scmp.ne.s32.totalorder %s1024_s5, %s858_s22  ;;  %p862_p10 = scmp.lt.u32.totalorder %s858_s22, %s1024_s5 }
 0x35c   :  { %p864_p11 = pnand %p862_p10, %p859_p9 }
 0x35e   :  { %867 = shalt.err (!%p864_p11)
}
 0x35f   :  { %482 = dma.vmem_to_hbm [thread:$0]  %s477_s17, 256, %s1024_s5, [#allocation4], %s878_s30, %s878_s30, %s879_s6  }
 0x360   :  { %874 = dma.done.wait [#allocation4], 256  }
 0x361   :  { %875 = vsyncadd [#allocation4], 4294967040 }
 0x362   :  { %486 = vsyncpa [#allocation3], 1 }
 0x363   :  { %487 = vsyncpa [#allocation6], 1 }
 0x364   :  { %488 = vsyncpa [#allocation9], 1 }
 0x365   :  { %489 = vsyncpa [#allocation4], 1 }

</bundles_post_ra>
